<compile_context>
chip_gen: v7x
topology: tpu7x:2x2x1
jax: 0.10.0
libtpu: 0.0.40
codegen_flags: <defaults>
</compile_context>

<pallas_src>
import jax
import jax.numpy as jnp
from jax import lax
from jax.experimental import pallas as pl
from jax.experimental.pallas import tpu as pltpu


def _round_up(x, m):
    return ((x + m - 1) // m) * m


def _vmem_budget_bytes():
    """Per-generation VMEM budget with headroom (~48 MiB v7x, ~96 MiB v5e/v6e)."""
    cap = 64 * 1024 * 1024  # conservative default (v7x per-TC physical)
    try:
        info = pltpu.get_tpu_info()
        cap = int(getattr(info, "vmem_capacity_bytes", cap))
    except Exception:
        pass
    return (cap * 3) // 4


def _pick_tm(N, C, K, Kp, x_item, w_item, out_item, tm_cap, budget):
    """Largest batch tile (multiple of 8, <= tm_cap) whose buffers fit the budget."""
    # resident weight (worst case 2 buffers) + bias (one padded sublane tile)
    fixed = 2 * Kp * C * w_item + 2 * 8 * Kp * 4
    # double-buffered x / out blocks + f32 (TM, Kp) matmul intermediate
    per_row = 2 * C * x_item + 2 * K * out_item + 2 * Kp * 4
    avail = max(budget - fixed, per_row * 8)
    tm = min(tm_cap, avail // per_row, _round_up(N, 8))
    tm = max(8, (int(tm) // 8) * 8)
    return tm


def _classifier_kernel(x_ref, w_ref, b_ref, o_ref):
    # x_ref: (TM, C)   -- streamed batch tile
    # w_ref: (C, Kp)   -- resident, pre-transposed + class-padded weight
    # b_ref: (1, K)    -- resident, unpadded bias
    # o_ref: (TM, K)   -- unpadded output tile
    k = o_ref.shape[-1]
    acc = jnp.dot(x_ref[...], w_ref[...], preferred_element_type=jnp.float32)
    o_ref[...] = (acc[:, :k] + b_ref[...].astype(jnp.float32)).astype(o_ref.dtype)


def prepare_classifier_params(weight, bias, dtype=None):
    """One-time parameter preparation (hoist out of the hot path).

    weight : [K, C] (PyTorch nn.Linear layout), bias : [K]
    Returns (w_t, b2d) with w_t : [C, Kp] (Kp = round_up(K, 128)), b2d : [1, K].
    Optionally cast the weight (e.g. bf16); the kernel accumulates in f32.
    """
    K, C = weight.shape
    assert bias.shape == (K,)
    Kp = _round_up(K, 128)
    w_t = weight.T
    if Kp != K:
        w_t = jnp.pad(w_t, ((0, 0), (0, Kp - K)))
    if dtype is not None:
        w_t = w_t.astype(dtype)
    return w_t, bias.reshape(1, K)


def classifier_1fc_apply(x, w_t, b2d, droprate=0.0, *, tm=1024, min_pallas_rows=16):
    """Hot path: x @ W.T + b with pre-prepared (transposed/padded) params."""
    assert droprate == 0.0, "only droprate=0.0 (eval / identity dropout) supported"

    orig_shape = x.shape
    C = orig_shape[-1]
    Cw, Kp = w_t.shape
    K = b2d.shape[-1]
    assert C == Cw and Kp % 128 == 0 and 0 < K <= Kp

    x2 = x.reshape(-1, C)
    N = x2.shape[0]
    out_dtype = x.dtype
    out_item = jnp.dtype(out_dtype).itemsize

    # Tiny-N fast path: pallas launch + one-time weight DMA would dominate.
    if N < min_pallas_rows:
        y = jnp.dot(x2, w_t, preferred_element_type=jnp.float32)[:, :K]
        y = (y + b2d.astype(jnp.float32)).astype(out_dtype)
        return y.reshape(orig_shape[:-1] + (K,))

    budget = _vmem_budget_bytes()
    TM = _pick_tm(N, C, K, Kp, x2.dtype.itemsize, w_t.dtype.itemsize,
                  out_item, tm, budget)
    # Make sure the parallel batch axis has >=2 steps for mid/large N so both
    # v7x TensorCores get work (no-op cost on single-TC v5e/v6e).
    if N > 256 and pl.cdiv(N, TM) == 1:
        TM = max(8, _round_up(pl.cdiv(N, 2), 8))
    grid = (pl.cdiv(N, TM),)

    # VMEM limit: 2x headroom over the estimate, capped at the per-gen budget.
    est = (2 * TM * C * x2.dtype.itemsize      # double-buffered x tile
           + 2 * TM * K * out_item             # double-buffered out tile
           + 2 * Kp * C * w_t.dtype.itemsize   # resident weight (2 bufs worst case)
           + TM * Kp * 4                       # f32 matmul intermediate
           + 8 * Kp * 4)                       # bias tile
    vmem_limit = int(min(max(2 * est, 16 * 1024 * 1024), budget))

    y = pl.pallas_call(
        _classifier_kernel,
        out_shape=jax.ShapeDtypeStruct((N, K), out_dtype),
        grid_spec=pltpu.PrefetchScalarGridSpec(
            num_scalar_prefetch=0,
            grid=grid,
            in_specs=[
                pl.BlockSpec((TM, C), lambda i: (i, 0)),   # x streams
                pl.BlockSpec((C, Kp), lambda i: (0, 0)),   # weight resident
                pl.BlockSpec((1, K), lambda i: (0, 0)),    # bias resident
            ],
            out_specs=pl.BlockSpec((TM, K), lambda i: (i, 0)),
        ),
        compiler_params=pltpu.CompilerParams(
            dimension_semantics=("parallel",),   # megacore on v7x; no-op v5e/v6e
            vmem_limit_bytes=vmem_limit,
        ),
    )(x2, w_t, b2d)

    return y.reshape(orig_shape[:-1] + (K,))


def classifier_1fc(x, weight, bias, droprate=0.0, **kwargs):
    """Convenience wrapper taking raw nn.Linear-layout params.

    For repeated inference, call prepare_classifier_params() once and use
    classifier_1fc_apply() directly (the pad/transpose are then off the hot path).
    """
    w_t, b2d = prepare_classifier_params(weight, bias)
    return classifier_1fc_apply(x, w_t, b2d, droprate=droprate, **kwargs)


if __name__ == "__main__":
    key = jax.random.PRNGKey(0)
    n_channels, n_classes = 32, 4
    kx1, kx2, kx3, kw, kb = jax.random.split(key, 5)

    # Deterministic params (mimic nn.Linear uniform(-1/sqrt(C), 1/sqrt(C)))
    bound = 1.0 / (n_channels ** 0.5)
    weight = jax.random.uniform(kw, (n_classes, n_channels),
                                minval=-bound, maxval=bound, dtype=jnp.float32)
    bias = jax.random.uniform(kb, (n_classes,),
                              minval=-bound, maxval=bound, dtype=jnp.float32)
    w_t, b2d = prepare_classifier_params(weight, bias)

    def ref(xx):
        y = lax.dot_general(xx, weight, (((1,), (1,)), ((), ())),
                            precision=lax.Precision.HIGHEST)
        return y + bias

    # 1) Single full tile through the convenience wrapper.
    x1 = jax.random.normal(kx1, (64, n_channels), dtype=jnp.float32)
    y1 = jax.block_until_ready(classifier_1fc(x1, weight, bias, droprate=0.0))
    assert y1.shape == (64, n_classes)
    assert jnp.allclose(y1, ref(x1), atol=2e-5, rtol=2e-5), "mismatch (full tile)"

    # 2) Multi-step streaming grid + partial last tile, prepared-params hot path.
    x2 = jax.random.normal(kx2, (200, n_channels), dtype=jnp.float32)
    y2 = jax.block_until_ready(classifier_1fc_apply(x2, w_t, b2d, tm=64))
    assert y2.shape == (200, n_classes)
    assert jnp.allclose(y2, ref(x2), atol=2e-5, rtol=2e-5), "mismatch (partial tile)"

    # 3) Tiny-N fast path (no pallas launch).
    x3 = jax.random.normal(kx3, (8, n_channels), dtype=jnp.float32)
    y3 = jax.block_until_ready(classifier_1fc_apply(x3, w_t, b2d))
    assert jnp.allclose(y3, ref(x3), atol=2e-5, rtol=2e-5), "mismatch (tiny N)"

    print("KERNEL_OK")
</pallas_src>

<mosaic_0001>
module attributes {stable_mosaic.version = 11 : i64} {
  func.func @_classifier_kernel(%arg0: i32, %arg1: memref<64x32xf32, #tpu.memory_space<vmem>>, %arg2: memref<32x128xf32, #tpu.memory_space<vmem>>, %arg3: memref<1x4xf32, #tpu.memory_space<vmem>>, %arg4: memref<64x4xf32, #tpu.memory_space<vmem>>) attributes {dimension_semantics = [#tpu.dimension_semantics<parallel>], iteration_bounds = array<i64: 1>, scalar_prefetch = 0 : i64, scratch_operands = 0 : i64, tpu.core_type = #tpu.core_type<tc>, window_params = [{transform_indices = @transform_0, window_bounds = array<i64: 64, 32>}, {pipeline_mode = #tpu.pipeline_mode<synchronous>, transform_indices = @transform_1, window_bounds = array<i64: 32, 128>}, {pipeline_mode = #tpu.pipeline_mode<synchronous>, transform_indices = @transform_2, window_bounds = array<i64: 1, 4>}, {transform_indices = @transform_3, window_bounds = array<i64: 64, 4>}]} {
    %c0 = arith.constant 0 : index
    %c0_0 = arith.constant 0 : index
    %0 = vector.load %arg1[%c0, %c0_0] : memref<64x32xf32, #tpu.memory_space<vmem>>, vector<64x32xf32>
    %c0_1 = arith.constant 0 : index
    %c0_2 = arith.constant 0 : index
    %1 = vector.load %arg2[%c0_1, %c0_2] : memref<32x128xf32, #tpu.memory_space<vmem>>, vector<32x128xf32>
    %cst = arith.constant dense<0.000000e+00> : vector<64x128xf32>
    %2 = tpu.matmul %0, %1, %cst {dimension_numbers = #tpu.dot_dimension_numbers<[1], [0], [0], [1], [0, 0, 1, 1], [], []>} : vector<64x32xf32>, vector<32x128xf32>, vector<64x128xf32> -> vector<64x128xf32>
    %3 = vector.extract_strided_slice %2 {offsets = [0, 0], sizes = [64, 4], strides = [1, 1]} : vector<64x128xf32> to vector<64x4xf32>
    %c0_3 = arith.constant 0 : index
    %c0_4 = arith.constant 0 : index
    %4 = vector.load %arg3[%c0_3, %c0_4] : memref<1x4xf32, #tpu.memory_space<vmem>>, vector<1x4xf32>
    %5 = vector.broadcast %4 : vector<1x4xf32> to vector<64x4xf32>
    %6 = arith.addf %3, %5 : vector<64x4xf32>
    %c0_5 = arith.constant 0 : index
    %c0_6 = arith.constant 0 : index
    %7 = vector.load %arg4[%c0_5, %c0_6] : memref<64x4xf32, #tpu.memory_space<vmem>>, vector<64x4xf32>
    tpu.vector_store %arg4[%c0_5, %c0_6], %6 {strides = array<i32>} : memref<64x4xf32, #tpu.memory_space<vmem>>, vector<64x4xf32>,
    return
  }
  func.func @transform_0(%arg0: i32) -> (i32, i32) {
    %c0_i32 = arith.constant 0 : i32
    %c0_i32_0 = arith.constant 0 : i32
    return %arg0, %c0_i32 : i32, i32
  }
  func.func @transform_1(%arg0: i32) -> (i32, i32) {
    %c0_i32 = arith.constant 0 : i32
    %c0_i32_0 = arith.constant 0 : i32
    %c0_i32_1 = arith.constant 0 : i32
    return %c0_i32, %c0_i32_0 : i32, i32
  }
  func.func @transform_2(%arg0: i32) -> (i32, i32) {
    %c0_i32 = arith.constant 0 : i32
    %c0_i32_0 = arith.constant 0 : i32
    %c0_i32_1 = arith.constant 0 : i32
    return %c0_i32, %c0_i32_0 : i32, i32
  }
  func.func @transform_3(%arg0: i32) -> (i32, i32) {
    %c0_i32 = arith.constant 0 : i32
    %c0_i32_0 = arith.constant 0 : i32
    return %arg0, %c0_i32 : i32, i32
  }
}

</mosaic_0001>

<bundles_post_ra>
// kernel: tpu_custom_call.1
= control target key start
LH: loop header
LB: loop body
LE: loop exit
PB: predicated region body
PF: predicated region fallthrough
CT: control target
= control target key end

     0   :  { %vm26_vm0 = vcmask 261120   ;;  %vm171_vm1 = vcmask 31744   ;;  %s336_s1 = inlined_call_operand.vmem [shape: f32[32,128], index: 1, kind: input, shape index: {}]   ;;  %s337_s0 = inlined_call_operand.vmem [shape: f32[64,32], index: 0, kind: input, shape index: {}]   ;;  %s338_s2 = inlined_call_operand.vmem [shape: f32[1,4], index: 2, kind: input, shape index: {}]   ;;  %s339_s3 = inlined_call_operand.vmem [shape: f32[64,4], index: 3, kind: output, shape index: {}]  }
   0x1   :  { %v22_v0 = vld [vmem:[%s336_s1] sm:$0xff]  ;;  %v23_v1 = vld [vmem:[%s336_s1 + $0x8] sm:$0xff]  ;;  %v24_v2 = vld [vmem:[%s336_s1 + $0x10] sm:$0xff] }
   0x2   :  { %v225_v3 = vpack.c.bf16 %v23_v1, %v22_v0  ;;  %v25_v4 = vld [vmem:[%s336_s1 + $0x18] sm:$0xff]  ;;  %v14_v5 = vld [vmem:[%s337_s0] sm:$0xff]  ;;  %v15_v8 = vld [vmem:[%s337_s0 + $0x8] sm:$0xff] }
   0x3   :  { %v18_v6 = vld [vmem:[%s337_s0 + $0x20] sm:$0xff]  ;;  %v229_v7 = vpack.c.bf16 %v25_v4, %v24_v2  ;;  %213 = vmatprep.mubr.msk.f32.mxu0 %vm26_vm0, %v14_v5  ;;  %v19_v9 = vld [vmem:[%s337_s0 + $0x28] sm:$0xff]  ;;  %v16_v10 = vld [vmem:[%s337_s0 + $0x10] sm:$0xff] }
   0x4   :  { %219 = vmatprep.mubr.msk.f32.mxu1 %vm26_vm0, %v18_v6  ;;  %226 = vmatprep.subr.bf16.mxu0 %v225_v3  ;;  %v20_v11 = vld [vmem:[%s337_s0 + $0x30] sm:$0xff]  ;;  %v17_v12 = vld [vmem:[%s337_s0 + $0x18] sm:$0xff]  ;;  %v192_v14 = vld [vmem:[%s338_s2] ss:$0 sm:$0xff] }
   0x5   :  { %233 = vmatprep.subr.bf16.mxu1 %v225_v3  ;;  %228 = vmatpush3.bf16.msra.mxu0 %v225_v3  ;;  %v21_v13 = vld [vmem:[%s337_s0 + $0x38] sm:$0xff] }
   0x6   :  { %235 = vmatpush3.bf16.msra.mxu1 %v225_v3  ;;  %230 = vmatprep.subr.bf16.mxu0 %v229_v7 }
   0x7   :  { %234 = vmatprep.subr.bf16.mxu1 %v229_v7 }
   0x9   :  { %232 = vmatpush3.bf16.msra.mxu0 %v229_v7 }
   0xa   :  { %236 = vmatpush3.bf16.msra.mxu1 %v229_v7 }
   0xc   :  { %214 = vmatmul.mubr.msk.f32.vlgmr.msra.gmra.mrb[0].mxu0 %vm26_vm0, %v15_v8 }
   0xd   :  { %220 = vmatmul.mubr.msk.f32.vlgmr.msra.gmra.mrb[0].mxu1 %vm26_vm0, %v19_v9  ;;  %216 = vmatprep.mubr.msk.f32.mxu0 %vm26_vm0, %v16_v10 }
   0xe   :  { %222 = vmatprep.mubr.msk.f32.mxu1 %vm26_vm0, %v20_v11 }
  0x10   :  { %217 = vmatmul.mubr.msk.f32.gmra.mrb[2].mxu0 %vm26_vm0, %v17_v12 }
  0x11   :  { %223 = vmatmul.mubr.msk.f32.gmra.mrb[2].mxu1 %vm26_vm0, %v21_v13 }
  0xdf   :  { %v215_v15 = vpop.f32.mrb[0].mxu0 }
  0xe0   :  { %v221_v16 = vpop.f32.mrb[0].mxu1  ;;  %v164_v17 = vadd.f32 %v215_v15, %v192_v14  ;;  %v117_v19 = vpop.f32.mrb[1].mxu0 }
  0xe1   :  { %v168_v18 = vadd.f32 %v221_v16, %v192_v14  ;;  %v137_v20 = vpop.f32.mrb[1].mxu1  ;;  %v163_v21 = vadd.f32 %v192_v14, %v117_v19 }
  0xe2   :  { %v167_v22 = vadd.f32 %v192_v14, %v137_v20  ;;  %173 = vst.msk [vmem:[%s339_s3 + $0x8] sm:$0xff] %vm171_vm1, %v164_v17 }
  0xe3   :  { %177 = vst.msk [vmem:[%s339_s3 + $0x28] sm:$0xff] %vm171_vm1, %v168_v18  ;;  %172 = vst.msk [vmem:[%s339_s3] sm:$0xff] %vm171_vm1, %v163_v21  ;;  %v218_v23 = vpop.f32.mrb[2].mxu0 }
  0xe4   :  { %176 = vst.msk [vmem:[%s339_s3 + $0x20] sm:$0xff] %vm171_vm1, %v167_v22  ;;  %v224_v24 = vpop.f32.mrb[2].mxu1  ;;  %v166_v25 = vadd.f32 %v218_v23, %v192_v14  ;;  %v127_v27 = vpop.f32.mrb[3].mxu0 }
  0xe5   :  { %v170_v26 = vadd.f32 %v224_v24, %v192_v14  ;;  %v147_v28 = vpop.f32.mrb[3].mxu1  ;;  %v165_v29 = vadd.f32 %v192_v14, %v127_v27 }
  0xe6   :  { %v169_v30 = vadd.f32 %v192_v14, %v147_v28  ;;  %175 = vst.msk [vmem:[%s339_s3 + $0x18] sm:$0xff] %vm171_vm1, %v166_v25 }
  0xe7   :  { %179 = vst.msk [vmem:[%s339_s3 + $0x38] sm:$0xff] %vm171_vm1, %v170_v26  ;;  %174 = vst.msk [vmem:[%s339_s3 + $0x10] sm:$0xff] %vm171_vm1, %v165_v29 }
  0xe8   :  { %178 = vst.msk [vmem:[%s339_s3 + $0x30] sm:$0xff] %vm171_vm1, %v169_v30 }

</bundles_post_ra>
